<compile_context>
chip_gen: v5e
topology: v5e:2x2
jax: 0.10.0
libtpu: 0.0.40
codegen_flags: <defaults>
</compile_context>

<pallas_src>
import jax
import jax.numpy as jnp
from jax.experimental import pallas as pl
from jax.experimental.pallas import tpu as pltpu


def reward_head_kernel(img_ref, txt_ref, w_img_ref, w_txt_ref, b_ref, score_ref):
    # (TILE_B, H_img) @ (H_img, 1) + (TILE_B, H_txt) @ (H_txt, 1) + b
    # Canonical MXU orientation, f32 accumulation.  The concat in the module
    # is realised as the sum of the two partial matmuls (no in-kernel copy).
    s = jnp.dot(img_ref[...], w_img_ref[...], preferred_element_type=jnp.float32)
    s = s + jnp.dot(txt_ref[...], w_txt_ref[...], preferred_element_type=jnp.float32)
    score_ref[...] = (s + b_ref[0]).astype(score_ref.dtype)


def reward_model_head(img_pooled, txt_pooled, weight, bias, labels, *, tile_b=2048):
    """Pallas wrapper.

    img_pooled : (B, H_img)            -- stands in for vit.pooler_output
    txt_pooled : (B, H_txt)            -- stands in for text.pooler_output
    weight     : (1, H_img + H_txt)    -- nn.Linear weight
    bias       : (1,)                  -- nn.Linear bias
    labels     : (B, 1)
    returns (scores (B, 1) float32, loss scalar float32)
    """
    B, h_img = img_pooled.shape
    _, h_txt = txt_pooled.shape
    act_dtype = img_pooled.dtype
    act_bytes = jnp.dtype(act_dtype).itemsize

    # Grid-invariant weight columns in the activation dtype.  (H, 1) equals the
    # full array dims, so the BlockSpec is legal for any H.
    # NOTE: if a real encoder yields H not a multiple of 128, the activation
    # blocks still work (last dim equals the full dim) but waste lanes; pad the
    # feature dim once up front for best VMEM/vector-load efficiency.
    w_img = weight[:, :h_img].astype(act_dtype).reshape(h_img, 1)
    w_txt = weight[:, h_img:].astype(act_dtype).reshape(h_txt, 1)

    # Batch tile: multiple of 8 sublanes, no larger than the (rounded-up) batch.
    # The last block may be ragged -- Pallas drops OOB rows on writeback.
    tile_b = min(int(tile_b), pl.cdiv(B, 8) * 8)
    tile_b = max(8, (tile_b // 8) * 8)
    num_tiles = pl.cdiv(B, tile_b)

    cost = pl.CostEstimate(
        flops=2 * B * (h_img + h_txt),
        transcendentals=0,
        bytes_accessed=int(B * (h_img + h_txt) * act_bytes
                           + (h_img + h_txt) * act_bytes
                           + B * 4),
    )

    scores = pl.pallas_call(
        reward_head_kernel,
        grid=(num_tiles,),
        in_specs=[
            pl.BlockSpec((tile_b, h_img), lambda i: (i, 0)),    # img activations
            pl.BlockSpec((tile_b, h_txt), lambda i: (i, 0)),    # txt activations
            pl.BlockSpec((h_img, 1), lambda i: (0, 0)),         # w_img column (invariant)
            pl.BlockSpec((h_txt, 1), lambda i: (0, 0)),         # w_txt column (invariant)
            pl.BlockSpec(memory_space=pltpu.MemorySpace.SMEM),  # bias scalar
        ],
        out_specs=pl.BlockSpec((tile_b, 1), lambda i: (i, 0)),  # scores
        out_shape=jax.ShapeDtypeStruct((B, 1), jnp.float32),
        compiler_params=pltpu.CompilerParams(
            dimension_semantics=("parallel",),
            vmem_limit_bytes=48 * 1024 * 1024),
        cost_estimate=cost,
    )(img_pooled, txt_pooled, w_img, w_txt, bias.astype(jnp.float32))

    # MSE in the wrapper (reads only B floats; removes one HBM write per grid
    # step and all mask/reduce work from the kernel body).
    loss = jnp.mean((scores - labels.astype(jnp.float32)) ** 2)
    return scores, loss


def reference_head(img_pooled, txt_pooled, weight, bias, labels):
    cat = jnp.concatenate([img_pooled, txt_pooled], axis=1)
    out = cat @ weight.T + bias                     # (B, 1)
    loss = jnp.mean((out - labels) ** 2)
    return out, loss


if __name__ == "__main__":
    # TODO(synk): the pretrained ViT / text encoders and the tokenizer are not
    # translatable to a Pallas kernel; their pooled outputs are synthesized.
    B = 2
    H_IMG = 32   # stand-in for image.config.hidden_size
    H_TXT = 32   # stand-in for text.config.hidden_size

    key = jax.random.PRNGKey(0)
    k_img, k_txt, k_w, k_b, k_lbl = jax.random.split(key, 5)

    # bf16 pooled activations (kernel streams them without any wrapper upcast).
    img_pooled = jax.random.normal(k_img, (B, H_IMG), jnp.float32).astype(jnp.bfloat16)
    txt_pooled = jax.random.normal(k_txt, (B, H_TXT), jnp.float32).astype(jnp.bfloat16)
    labels = jax.random.normal(k_lbl, (B, 1), dtype=jnp.float32)

    # Deterministic Linear(H_img + H_txt, 1) params (PyTorch-style uniform bound).
    fan_in = H_IMG + H_TXT
    bound = 1.0 / float(fan_in) ** 0.5
    weight = jax.random.uniform(k_w, (1, fan_in), jnp.float32, -bound, bound)
    bias = jax.random.uniform(k_b, (1,), jnp.float32, -bound, bound)

    scores, loss = reward_model_head(img_pooled, txt_pooled, weight, bias, labels)
    jax.block_until_ready((scores, loss))

    # Reference in f32 on the exact bf16 values the kernel consumed.
    # NOTE: weights/activations are consumed in bf16 with f32 accumulation,
    # which deviates slightly from PyTorch's f32 nn.Linear (~1e-3 rel for
    # large H); the reference is matched to that contract.
    w_bf = weight.astype(jnp.bfloat16).astype(jnp.float32)
    ref_scores, ref_loss = reference_head(
        img_pooled.astype(jnp.float32), txt_pooled.astype(jnp.float32),
        w_bf, bias, labels)

    assert jnp.allclose(scores, ref_scores, atol=1e-4, rtol=1e-4)
    assert jnp.allclose(loss, ref_loss, atol=1e-4, rtol=1e-4)

    print("KERNEL_OK")
</pallas_src>

<mosaic_0001>
module attributes {stable_mosaic.version = 11 : i64} {
  func.func @reward_head_kernel(%arg0: i32, %arg1: memref<8x32xbf16, #tpu.memory_space<vmem>>, %arg2: memref<8x32xbf16, #tpu.memory_space<vmem>>, %arg3: memref<32x1xbf16, #tpu.memory_space<vmem>>, %arg4: memref<32x1xbf16, #tpu.memory_space<vmem>>, %arg5: memref<1xf32, #tpu.memory_space<smem>>, %arg6: memref<8x1xf32, #tpu.memory_space<vmem>>) attributes {dimension_semantics = [#tpu.dimension_semantics<parallel>], iteration_bounds = array<i64: 1>, scalar_prefetch = 0 : i64, scratch_operands = 0 : i64, tpu.core_type = #tpu.core_type<tc>, window_params = [{transform_indices = @transform_0, window_bounds = array<i64: 8, 32>}, {transform_indices = @transform_1, window_bounds = array<i64: 8, 32>}, {pipeline_mode = #tpu.pipeline_mode<synchronous>, transform_indices = @transform_2, window_bounds = array<i64: 32, 1>}, {pipeline_mode = #tpu.pipeline_mode<synchronous>, transform_indices = @transform_3, window_bounds = array<i64: 32, 1>}, {transform_indices = @transform_4, window_bounds = array<i64: 1>}, {transform_indices = @transform_5, window_bounds = array<i64: 8, 1>}]} {
    %c0 = arith.constant 0 : index
    %c0_0 = arith.constant 0 : index
    %0 = vector.load %arg1[%c0, %c0_0] : memref<8x32xbf16, #tpu.memory_space<vmem>>, vector<8x32xbf16>
    %c0_1 = arith.constant 0 : index
    %c0_2 = arith.constant 0 : index
    %1 = vector.load %arg3[%c0_1, %c0_2] : memref<32x1xbf16, #tpu.memory_space<vmem>>, vector<32x1xbf16>
    %cst = arith.constant dense<0.000000e+00> : vector<8x1xf32>
    %2 = tpu.matmul %0, %1, %cst {dimension_numbers = #tpu.dot_dimension_numbers<[1], [0], [0], [1], [0, 0, 1, 1], [], []>} : vector<8x32xbf16>, vector<32x1xbf16>, vector<8x1xf32> -> vector<8x1xf32>
    %c0_3 = arith.constant 0 : index
    %c0_4 = arith.constant 0 : index
    %3 = vector.load %arg2[%c0_3, %c0_4] : memref<8x32xbf16, #tpu.memory_space<vmem>>, vector<8x32xbf16>
    %c0_5 = arith.constant 0 : index
    %c0_6 = arith.constant 0 : index
    %4 = vector.load %arg4[%c0_5, %c0_6] : memref<32x1xbf16, #tpu.memory_space<vmem>>, vector<32x1xbf16>
    %cst_7 = arith.constant dense<0.000000e+00> : vector<8x1xf32>
    %5 = tpu.matmul %3, %4, %cst_7 {dimension_numbers = #tpu.dot_dimension_numbers<[1], [0], [0], [1], [0, 0, 1, 1], [], []>} : vector<8x32xbf16>, vector<32x1xbf16>, vector<8x1xf32> -> vector<8x1xf32>
    %6 = arith.addf %2, %5 : vector<8x1xf32>
    %c0_8 = arith.constant 0 : index
    %7 = memref.load %arg5[%c0_8] : memref<1xf32, #tpu.memory_space<smem>>
    %8 = vector.broadcast %7 : f32 to vector<8x1xf32>
    %9 = arith.addf %6, %8 : vector<8x1xf32>
    %c0_9 = arith.constant 0 : index
    %c0_10 = arith.constant 0 : index
    %10 = vector.load %arg6[%c0_9, %c0_10] : memref<8x1xf32, #tpu.memory_space<vmem>>, vector<8x1xf32>
    tpu.vector_store %arg6[%c0_9, %c0_10], %9 {strides = array<i32>} : memref<8x1xf32, #tpu.memory_space<vmem>>, vector<8x1xf32>,
    return
  }
  func.func @transform_0(%arg0: i32) -> (i32, i32) {
    %c0_i32 = arith.constant 0 : i32
    %c0_i32_0 = arith.constant 0 : i32
    return %arg0, %c0_i32 : i32, i32
  }
  func.func @transform_1(%arg0: i32) -> (i32, i32) {
    %c0_i32 = arith.constant 0 : i32
    %c0_i32_0 = arith.constant 0 : i32
    return %arg0, %c0_i32 : i32, i32
  }
  func.func @transform_2(%arg0: i32) -> (i32, i32) {
    %c0_i32 = arith.constant 0 : i32
    %c0_i32_0 = arith.constant 0 : i32
    %c0_i32_1 = arith.constant 0 : i32
    return %c0_i32, %c0_i32_0 : i32, i32
  }
  func.func @transform_3(%arg0: i32) -> (i32, i32) {
    %c0_i32 = arith.constant 0 : i32
    %c0_i32_0 = arith.constant 0 : i32
    %c0_i32_1 = arith.constant 0 : i32
    return %c0_i32, %c0_i32_0 : i32, i32
  }
  func.func @transform_4(%arg0: i32) -> i32 {
    %c0_i32 = arith.constant 0 : i32
    %c0_i32_0 = arith.constant 0 : i32
    return %c0_i32 : i32
  }
  func.func @transform_5(%arg0: i32) -> (i32, i32) {
    %c0_i32 = arith.constant 0 : i32
    %c0_i32_0 = arith.constant 0 : i32
    return %arg0, %c0_i32 : i32, i32
  }
}

</mosaic_0001>

<bundles_post_ra>
// kernel: tpu_custom_call.1
= control target key start
LH: loop header
LB: loop body
LE: loop exit
PB: predicated region body
PF: predicated region fallthrough
CT: control target
= control target key end

     0   :  { %vm62_vm0 = vcmask 261120   ;;  %vm120_vm1 = vcmask 7168   ;;  %s257_s0 = inlined_call_operand.vmem [shape: bf16[2,32], index: 0, kind: input, shape index: {}]   ;;  %s258_s1 = inlined_call_operand.vmem [shape: bf16[2,32], index: 1, kind: input, shape index: {}]   ;;  %s259_s2 = inlined_call_operand.vmem [shape: bf16[32,1], index: 2, kind: input, shape index: {}]   ;;  %s260_s3 = inlined_call_operand.vmem [shape: bf16[32,1], index: 3, kind: input, shape index: {}]   ;;  %s261_s4 = inlined_call_operand.<no memory space> [shape: f32[1], index: 4, kind: input, shape index: {}]   ;;  %s262_s5 = inlined_call_operand.vmem [shape: f32[2,1], index: 5, kind: output, shape index: {}]  }
   0x1   :  { %v184_v0 = vld [vmem:[%s260_s3 + $0x8] sm:$0xff]  ;;  %v183_v1 = vld [vmem:[%s260_s3] sm:$0xff]  ;;  %v118_v17 = vstv %s261_s4 }
   0x2   :  { %71 = vmatpush.bf16.msra.mxu0 %v184_v0  ;;  %v30_v2 = vld [vmem:[%s258_s1] sm:$0x1]  ;;  %v31_v3 = vld [vmem:[%s258_s1 + $0x1] sm:$0x1]  ;;  %v32_v4 = vld [vmem:[%s258_s1 + $0x2] sm:$0x1] }
   0x3   :  { %v33_v5 = vld [vmem:[%s258_s1 + $0x3] sm:$0x1]  ;;  %39 = vst [vmem:[#allocation1] ss:$9 sm:$0xff] %v30_v2  ;;  %v182_v6 = vld [vmem:[%s259_s2 + $0x8] sm:$0xff] }
   0x4   :  { %42 = vst [vmem:[#allocation1 + $0x1] ss:$9 sm:$0xff] %v31_v3  ;;  %110 = vmatpush.bf16.msra.mxu1 %v182_v6  ;;  %v181_v7 = vld [vmem:[%s259_s2] sm:$0xff] }
   0x5   :  { %45 = vst [vmem:[#allocation1 + $0x2] ss:$9 sm:$0xff] %v32_v4  ;;  %v22_v8 = vld [vmem:[%s257_s0] sm:$0x1]  ;;  %v23_v9 = vld [vmem:[%s257_s0 + $0x1] sm:$0x1] }
   0x6   :  { %72 = vmatpush.bf16.msra.mxu0 %v183_v1  ;;  %48 = vst [vmem:[#allocation1 + $0x3] ss:$9 sm:$0xff] %v33_v5  ;;  %v24_v10 = vld [vmem:[%s257_s0 + $0x2] sm:$0x1]  ;;  %v25_v12 = vld [vmem:[%s257_s0 + $0x3] sm:$0x1] }
   0x8   :  { %111 = vmatpush.bf16.msra.mxu1 %v181_v7 }
   0xd   :  { %v49_v11 = vld [vmem:[#allocation1] sm:$0xff] }
   0xe   :  { %171 = vmatmul.msk.bf16.vlgmr.msra.gmra.mxu0 %vm62_vm0, %v49_v11  ;;  %79 = vst [vmem:[#allocation1] ss:$9 sm:$0xff] %v22_v8 }
   0xf   :  { %82 = vst [vmem:[#allocation1 + $0x1] ss:$9 sm:$0xff] %v23_v9 }
  0x10   :  { %85 = vst [vmem:[#allocation1 + $0x2] ss:$9 sm:$0xff] %v24_v10 }
  0x11   :  { %88 = vst [vmem:[#allocation1 + $0x3] ss:$9 sm:$0xff] %v25_v12 }
  0x18   :  { %v89_v13 = vld [vmem:[#allocation1] sm:$0xff] }
  0x19   :  { %180 = vmatmul.msk.bf16.vlgmr.msra.gmra.mxu1 %vm62_vm0, %v89_v13 }
  0x8b   :  { %v74_v14 = vpop.f32.mrf.mxu0 }
  0x93   :  { %v76_v15 = vpop.f32.mrf.mxu0 }
  0x96   :  { %v113_v16 = vpop.f32.mrf.mxu1 }
  0x97   :  { %v114_v18 = vadd.f32 %v113_v16, %v74_v14 }
  0x99   :  { %v119_v19 = vadd.f32 %v118_v17, %v114_v18 }
  0x9b   :  { %121 = vst.msk [vmem:[#allocation3] sm:$0xff] %vm120_vm1, %v119_v19 }
  0x9e   :  { %v115_v20 = vpop.f32.mrf.mxu1 }
  0xa2   :  { %v140_v21 = vld [vmem:[#allocation3] sm:$0x3] }
  0xa3   :  { %141 = vst [vmem:[%s262_s5] sm:$0x3] %v140_v21 }

</bundles_post_ra>
